<compile_context>
chip_gen: v6e
topology: v6e:2x2x1
jax: 0.10.0
libtpu: 0.0.40
codegen_flags: <defaults>
</compile_context>

<pallas_src>
import jax
import jax.numpy as jnp
from jax import lax
from jax.experimental import pallas as pl
from jax.experimental.pallas import tpu as pltpu

EPS = 1e-5


def _vmem_budget_bytes():
    """Generation-aware scoped-VMEM budget (~75% of physical capacity)."""
    cap = 64 << 20  # conservative fallback = v7x physical VMEM per TensorCore
    try:
        info = pltpu.get_tpu_info()
        cap = int(getattr(info, "vmem_capacity_bytes", cap) or cap)
    except Exception:
        pass
    return (cap * 3) // 4  # ~48 MiB on v7x, ~96 MiB on v5e/v6e


def _make_ibn_kernel(N, C, HW, hw_tile, num_tiles, needs_mask, resident):
    inv_hw = 1.0 / float(HW)
    inv_nhw = 1.0 / float(N * HW)

    def kernel(x_ref, gamma_ref, beta_ref, mask_ref, out_ref,
               sum_sc, sq_sc, scale_sc, shift_sc, *res_sc):
        x_res = res_sc[0] if resident else None
        phase = pl.program_id(0)
        j = pl.program_id(1)

        # ---- phase 0, first tile: zero the stats accumulators ---------------
        @pl.when(jnp.logical_and(phase == 0, j == 0))
        def _init():
            sum_sc[...] = jnp.zeros_like(sum_sc)
            sq_sc[...] = jnp.zeros_like(sq_sc)

        # ---- phase 0: accumulate per-(n,c) sum / sum-of-squares -------------
        @pl.when(phase == 0)
        def _accumulate():
            x_raw = x_ref[...]                           # (N, C, hw_tile)
            if resident:
                x_res[j] = x_raw                         # stash tile in VMEM
            x = x_raw.astype(jnp.float32)

            def acc(xv):
                # keepdims reductions stay in x's (C-on-sublane) layout.
                sum_sc[...] += jnp.sum(xv, axis=-1, keepdims=True)
                sq_sc[...] += jnp.sum(xv * xv, axis=-1, keepdims=True)

            if needs_mask:
                # Only the ragged LAST tile pays the mask cost.
                @pl.when(j < num_tiles - 1)
                def _full():
                    acc(x)

                @pl.when(j == num_tiles - 1)
                def _ragged():
                    lane = lax.broadcasted_iota(jnp.int32, x.shape, 2)
                    valid = (j * hw_tile + lane) < HW
                    acc(jnp.where(valid, x, 0.0))
            else:
                acc(x)

        # ---- phase 1, first tile: fold stats + affine into scale/shift ------
        @pl.when(jnp.logical_and(phase == 1, j == 0))
        def _finalize():
            s = sum_sc[...]                              # (N, C, 1) fp32
            q = sq_sc[...]
            # InstanceNorm half: per-(n, c) stats over HW.
            mean_in = s * inv_hw
            var_in = q * inv_hw - mean_in * mean_in
            # BatchNorm half: per-channel stats pooled over (N, HW).
            mean_bn = jnp.sum(s, axis=0, keepdims=True) * inv_nhw   # (1, C, 1)
            msq_bn = jnp.sum(q, axis=0, keepdims=True) * inv_nhw
            var_bn = msq_bn - mean_bn * mean_bn
            is_in = mask_ref[...][None] > 0.5            # (1, C, 1) bool
            mean = jnp.where(is_in, mean_in, mean_bn)    # (N, C, 1)
            var = jnp.where(is_in, var_in, var_bn)
            gamma = gamma_ref[...][None]                 # (1, C, 1)
            beta = beta_ref[...][None]
            scale = gamma * lax.rsqrt(var + EPS)         # (N, C, 1)
            scale_sc[...] = scale
            shift_sc[...] = beta - mean * scale

        # ---- phase 1: fused normalize + affine (lane-broadcast FMA) ---------
        @pl.when(phase == 1)
        def _normalize():
            if resident:
                xv = x_res[j].astype(jnp.float32)
            else:
                xv = x_ref[...].astype(jnp.float32)
            out_ref[...] = (xv * scale_sc[...] + shift_sc[...]).astype(out_ref.dtype)

    return kernel


def ibn_forward(x, gamma_in, beta_in, gamma_bn, beta_bn, half,
                *, max_hw_tile=None, allow_resident=True):
    """x: (N, C, H, W). Returns (N, C, H, W); matches torch IBN forward."""
    N, C, H, W = x.shape
    C1 = int(half)
    HW = H * W
    itemsize = jnp.dtype(x.dtype).itemsize

    x3 = x.reshape(N, C, HW)
    gamma = jnp.concatenate([gamma_in, gamma_bn]).astype(jnp.float32).reshape(C, 1)
    beta = jnp.concatenate([beta_in, beta_bn]).astype(jnp.float32).reshape(C, 1)
    in_mask = (jnp.arange(C) < C1).astype(jnp.float32).reshape(C, 1)

    budget = _vmem_budget_bytes()

    # --- derive hw_tile from the per-generation VMEM budget -------------------
    pad_c = -(-C // 8) * 8                      # sublane padding of C
    row_bytes = N * pad_c * itemsize            # cost of one padded lane column
    tgt_blk = max(1 << 20, budget // 16)        # 2x in + 2x out buffers <= budget/4
    cand = (tgt_blk // row_bytes // 128) * 128
    if max_hw_tile is not None:
        cand = min(cand, (max_hw_tile // 128) * 128)
    cand = max(int(cand), 128)
    hw_tile = HW if HW <= cand else cand
    num_tiles = int(pl.cdiv(HW, hw_tile))
    needs_mask = (HW % hw_tile) != 0

    pad_tile = -(-hw_tile // 128) * 128
    blk_bytes = N * pad_c * pad_tile * itemsize
    pipeline_bytes = 4 * blk_bytes              # 2x input + 2x output buffers
    stats_bytes = 4 * N * pad_c * 128 * 4       # sum/sq/scale/shift (padded)
    param_bytes = 3 * pad_c * 128 * 4           # gamma/beta/mask (padded)

    # Resident-x path: keep the whole slab in VMEM so phase 1 skips the HBM
    # re-read (3x -> 2x HBM traffic). Single-tile cases get this implicitly.
    resident_bytes = num_tiles * blk_bytes
    resident = bool(allow_resident and num_tiles > 1 and
                    resident_bytes + pipeline_bytes + stats_bytes + param_bytes
                    + (4 << 20) <= budget)

    need = pipeline_bytes + stats_bytes + param_bytes + (resident_bytes if resident else 0)
    vmem_limit = int(min(budget, max(32 << 20, 2 * need)))

    kernel = _make_ibn_kernel(N, C, HW, hw_tile, num_tiles, needs_mask, resident)

    if resident:
        last = num_tiles - 1
        # phase 0 walks the tiles; phase 1 pins the block index so no input
        # DMA is issued while reading from the resident scratch instead.
        x_index = lambda p, j: (0, 0, j * (1 - p) + last * p)
    else:
        x_index = lambda p, j: (0, 0, j)

    scratch_shapes = [
        pltpu.VMEM((N, C, 1), jnp.float32),     # sum accumulator
        pltpu.VMEM((N, C, 1), jnp.float32),     # sum-of-squares accumulator
        pltpu.VMEM((N, C, 1), jnp.float32),     # folded scale
        pltpu.VMEM((N, C, 1), jnp.float32),     # folded shift
    ]
    if resident:
        scratch_shapes.append(pltpu.VMEM((num_tiles, N, C, hw_tile), x.dtype))

    out3 = pl.pallas_call(
        kernel,
        out_shape=jax.ShapeDtypeStruct((N, C, HW), x.dtype),
        grid_spec=pltpu.PrefetchScalarGridSpec(
            num_scalar_prefetch=0,
            grid=(2, num_tiles),                # (phase, hw-tile)
            in_specs=[
                pl.BlockSpec((N, C, hw_tile), x_index),
                pl.BlockSpec((C, 1), lambda p, j: (0, 0)),   # gamma (resident)
                pl.BlockSpec((C, 1), lambda p, j: (0, 0)),   # beta  (resident)
                pl.BlockSpec((C, 1), lambda p, j: (0, 0)),   # IN/BN channel mask
            ],
            # Output index stays on block 0 during the stats phase so no
            # garbage output blocks are written back before phase 1.
            out_specs=pl.BlockSpec((N, C, hw_tile), lambda p, j: (0, 0, j * p)),
            scratch_shapes=scratch_shapes,
        ),
        compiler_params=pltpu.CompilerParams(
            # Both axes are sequential: phase 1 needs full stats from phase 0,
            # and tiles accumulate into shared VMEM scratch.
            dimension_semantics=("arbitrary", "arbitrary"),
            vmem_limit_bytes=vmem_limit,
        ),
    )(x3, gamma, beta, in_mask)

    return out3.reshape(N, C, H, W)


def ibn_reference(x, gamma_in, beta_in, gamma_bn, beta_bn, half):
    """Pure-JAX reference mirroring torch IN(affine) + BN(training)."""
    x_in = x[:, :half]
    x_bn = x[:, half:]
    mu = jnp.mean(x_in, axis=(2, 3), keepdims=True)
    var = jnp.var(x_in, axis=(2, 3), keepdims=True)
    y_in = (x_in - mu) / jnp.sqrt(var + EPS)
    y_in = y_in * gamma_in[None, :, None, None] + beta_in[None, :, None, None]
    mu_b = jnp.mean(x_bn, axis=(0, 2, 3), keepdims=True)
    var_b = jnp.var(x_bn, axis=(0, 2, 3), keepdims=True)
    y_bn = (x_bn - mu_b) / jnp.sqrt(var_b + EPS)
    y_bn = y_bn * gamma_bn[None, :, None, None] + beta_bn[None, :, None, None]
    return jnp.concatenate([y_in, y_bn], axis=1)


def _run_case(key, N, planes, H, W, **ibn_kwargs):
    half = planes // 2
    kx, k1, k2, k3, k4 = jax.random.split(key, 5)
    x = jax.random.normal(kx, (N, planes, H, W), dtype=jnp.float32)
    gamma_in = 1.0 + 0.1 * jax.random.normal(k1, (half,), dtype=jnp.float32)
    beta_in = 0.1 * jax.random.normal(k2, (half,), dtype=jnp.float32)
    gamma_bn = 1.0 + 0.1 * jax.random.normal(k3, (planes - half,), dtype=jnp.float32)
    beta_bn = 0.1 * jax.random.normal(k4, (planes - half,), dtype=jnp.float32)

    out = jax.block_until_ready(
        ibn_forward(x, gamma_in, beta_in, gamma_bn, beta_bn, half, **ibn_kwargs))
    ref = ibn_reference(x, gamma_in, beta_in, gamma_bn, beta_bn, half)
    assert out.shape == (N, planes, H, W)
    assert jnp.allclose(out, ref, atol=1e-4, rtol=1e-4), \
        f"mismatch vs reference for shape {(N, planes, H, W)} ({ibn_kwargs})"


if __name__ == "__main__":
    key = jax.random.PRNGKey(0)
    k0, k1, k2 = jax.random.split(key, 3)
    # 1) Budget-derived single-tile path (input block fetched once, reused by
    #    phase 1 because its block index does not change between phases).
    _run_case(k0, N=2, planes=4, H=32, W=32)
    # 2) Multi-tile path with ragged (masked) last tile + resident-x VMEM path,
    #    odd channel split (half=3). max_hw_tile only forces tiling for test
    #    coverage at small shapes; production uses the VMEM-budget tile.
    _run_case(k1, N=3, planes=6, H=30, W=30, max_hw_tile=512)
    # 3) Multi-tile streaming path (phase 1 re-reads x from HBM).
    _run_case(k2, N=2, planes=4, H=32, W=32, max_hw_tile=256, allow_resident=False)
    print("KERNEL_OK")
</pallas_src>

<mosaic_0001>
module attributes {stable_mosaic.version = 11 : i64} {
  func.func @kernel(%arg0: i32, %arg1: i32, %arg2: memref<2x4x1024xf32, #tpu.memory_space<vmem>>, %arg3: memref<4x1xf32, #tpu.memory_space<vmem>>, %arg4: memref<4x1xf32, #tpu.memory_space<vmem>>, %arg5: memref<4x1xf32, #tpu.memory_space<vmem>>, %arg6: memref<2x4x1024xf32, #tpu.memory_space<vmem>>, %arg7: memref<2x4x1xf32, #tpu.memory_space<vmem>>, %arg8: memref<2x4x1xf32, #tpu.memory_space<vmem>>, %arg9: memref<2x4x1xf32, #tpu.memory_space<vmem>>, %arg10: memref<2x4x1xf32, #tpu.memory_space<vmem>>) attributes {dimension_semantics = [#tpu.dimension_semantics<arbitrary>, #tpu.dimension_semantics<arbitrary>], iteration_bounds = array<i64: 2, 1>, scalar_prefetch = 0 : i64, scratch_operands = 4 : i64, tpu.core_type = #tpu.core_type<tc>, window_params = [{transform_indices = @transform_0, window_bounds = array<i64: 2, 4, 1024>}, {pipeline_mode = #tpu.pipeline_mode<synchronous>, transform_indices = @transform_1, window_bounds = array<i64: 4, 1>}, {pipeline_mode = #tpu.pipeline_mode<synchronous>, transform_indices = @transform_2, window_bounds = array<i64: 4, 1>}, {pipeline_mode = #tpu.pipeline_mode<synchronous>, transform_indices = @transform_3, window_bounds = array<i64: 4, 1>}, {transform_indices = @transform_4, window_bounds = array<i64: 2, 4, 1024>}]} {
    %c0_i32 = arith.constant 0 : i32
    %0 = arith.cmpi eq, %arg0, %c0_i32 : i32
    %c0_i32_0 = arith.constant 0 : i32
    %1 = arith.cmpi eq, %arg1, %c0_i32_0 : i32
    %2 = arith.andi %0, %1 : i1
    %3 = arith.extui %2 : i1 to i32
    %c0_i32_1 = arith.constant 0 : i32
    %4 = arith.cmpi ne, %3, %c0_i32_1 : i32
    scf.if %4 {
      %cst = arith.constant 0.000000e+00 : f32
      %16 = vector.broadcast %cst : f32 to vector<2x4x1xf32>
      %c0 = arith.constant 0 : index
      %c0_8 = arith.constant 0 : index
      %c0_9 = arith.constant 0 : index
      %17 = vector.load %arg7[%c0, %c0_8, %c0_9] : memref<2x4x1xf32, #tpu.memory_space<vmem>>, vector<2x4x1xf32>
      tpu.vector_store %arg7[%c0, %c0_8, %c0_9], %16 {strides = array<i32>} : memref<2x4x1xf32, #tpu.memory_space<vmem>>, vector<2x4x1xf32>,
      %cst_10 = arith.constant 0.000000e+00 : f32
      %18 = vector.broadcast %cst_10 : f32 to vector<2x4x1xf32>
      %c0_11 = arith.constant 0 : index
      %c0_12 = arith.constant 0 : index
      %c0_13 = arith.constant 0 : index
      %19 = vector.load %arg8[%c0_11, %c0_12, %c0_13] : memref<2x4x1xf32, #tpu.memory_space<vmem>>, vector<2x4x1xf32>
      tpu.vector_store %arg8[%c0_11, %c0_12, %c0_13], %18 {strides = array<i32>} : memref<2x4x1xf32, #tpu.memory_space<vmem>>, vector<2x4x1xf32>,
    } else {
    }
    %c0_i32_2 = arith.constant 0 : i32
    %5 = arith.cmpi eq, %arg0, %c0_i32_2 : i32
    %6 = arith.extui %5 : i1 to i32
    %c0_i32_3 = arith.constant 0 : i32
    %7 = arith.cmpi ne, %6, %c0_i32_3 : i32
    scf.if %7 {
      %c0 = arith.constant 0 : index
      %c0_8 = arith.constant 0 : index
      %c0_9 = arith.constant 0 : index
      %16 = vector.load %arg2[%c0, %c0_8, %c0_9] : memref<2x4x1024xf32, #tpu.memory_space<vmem>>, vector<2x4x1024xf32>
      %c0_10 = arith.constant 0 : index
      %c0_11 = arith.constant 0 : index
      %c0_12 = arith.constant 0 : index
      %17 = vector.load %arg7[%c0_10, %c0_11, %c0_12] : memref<2x4x1xf32, #tpu.memory_space<vmem>>, vector<2x4x1xf32>
      %cst = arith.constant dense<0.000000e+00> : vector<2x4xf32>
      %18 = vector.multi_reduction <add>, %16, %cst [2] : vector<2x4x1024xf32> to vector<2x4xf32>
      %19 = vector.shape_cast %18 : vector<2x4xf32> to vector<2x4x1xf32>
      %20 = arith.addf %17, %19 : vector<2x4x1xf32>
      %c0_13 = arith.constant 0 : index
      %c0_14 = arith.constant 0 : index
      %c0_15 = arith.constant 0 : index
      %21 = vector.load %arg7[%c0_13, %c0_14, %c0_15] : memref<2x4x1xf32, #tpu.memory_space<vmem>>, vector<2x4x1xf32>
      tpu.vector_store %arg7[%c0_13, %c0_14, %c0_15], %20 {strides = array<i32>} : memref<2x4x1xf32, #tpu.memory_space<vmem>>, vector<2x4x1xf32>,
      %c0_16 = arith.constant 0 : index
      %c0_17 = arith.constant 0 : index
      %c0_18 = arith.constant 0 : index
      %22 = vector.load %arg8[%c0_16, %c0_17, %c0_18] : memref<2x4x1xf32, #tpu.memory_space<vmem>>, vector<2x4x1xf32>
      %23 = arith.mulf %16, %16 : vector<2x4x1024xf32>
      %cst_19 = arith.constant dense<0.000000e+00> : vector<2x4xf32>
      %24 = vector.multi_reduction <add>, %23, %cst_19 [2] : vector<2x4x1024xf32> to vector<2x4xf32>
      %25 = vector.shape_cast %24 : vector<2x4xf32> to vector<2x4x1xf32>
      %26 = arith.addf %22, %25 : vector<2x4x1xf32>
      %c0_20 = arith.constant 0 : index
      %c0_21 = arith.constant 0 : index
      %c0_22 = arith.constant 0 : index
      %27 = vector.load %arg8[%c0_20, %c0_21, %c0_22] : memref<2x4x1xf32, #tpu.memory_space<vmem>>, vector<2x4x1xf32>
      tpu.vector_store %arg8[%c0_20, %c0_21, %c0_22], %26 {strides = array<i32>} : memref<2x4x1xf32, #tpu.memory_space<vmem>>, vector<2x4x1xf32>,
    } else {
    }
    %c1_i32 = arith.constant 1 : i32
    %8 = arith.cmpi eq, %arg0, %c1_i32 : i32
    %c0_i32_4 = arith.constant 0 : i32
    %9 = arith.cmpi eq, %arg1, %c0_i32_4 : i32
    %10 = arith.andi %8, %9 : i1
    %11 = arith.extui %10 : i1 to i32
    %c0_i32_5 = arith.constant 0 : i32
    %12 = arith.cmpi ne, %11, %c0_i32_5 : i32
    scf.if %12 {
      %c0 = arith.constant 0 : index
      %c0_8 = arith.constant 0 : index
      %c0_9 = arith.constant 0 : index
      %16 = vector.load %arg7[%c0, %c0_8, %c0_9] : memref<2x4x1xf32, #tpu.memory_space<vmem>>, vector<2x4x1xf32>
      %c0_10 = arith.constant 0 : index
      %c0_11 = arith.constant 0 : index
      %c0_12 = arith.constant 0 : index
      %17 = vector.load %arg8[%c0_10, %c0_11, %c0_12] : memref<2x4x1xf32, #tpu.memory_space<vmem>>, vector<2x4x1xf32>
      %cst = arith.constant 9.765625E-4 : f32
      %18 = vector.broadcast %cst : f32 to vector<2x4x1xf32>
      %19 = arith.mulf %16, %18 : vector<2x4x1xf32>
      %cst_13 = arith.constant 9.765625E-4 : f32
      %20 = vector.broadcast %cst_13 : f32 to vector<2x4x1xf32>
      %21 = arith.mulf %17, %20 : vector<2x4x1xf32>
      %22 = arith.mulf %19, %19 : vector<2x4x1xf32>
      %23 = arith.subf %21, %22 : vector<2x4x1xf32>
      %cst_14 = arith.constant dense<0.000000e+00> : vector<4x1xf32>
      %24 = vector.multi_reduction <add>, %16, %cst_14 [0] : vector<2x4x1xf32> to vector<4x1xf32>
      %25 = vector.shape_cast %24 : vector<4x1xf32> to vector<1x4x1xf32>
      %cst_15 = arith.constant 4.8828125E-4 : f32
      %26 = vector.broadcast %cst_15 : f32 to vector<1x4x1xf32>
      %27 = arith.mulf %25, %26 : vector<1x4x1xf32>
      %cst_16 = arith.constant dense<0.000000e+00> : vector<4x1xf32>
      %28 = vector.multi_reduction <add>, %17, %cst_16 [0] : vector<2x4x1xf32> to vector<4x1xf32>
      %29 = vector.shape_cast %28 : vector<4x1xf32> to vector<1x4x1xf32>
      %cst_17 = arith.constant 4.8828125E-4 : f32
      %30 = vector.broadcast %cst_17 : f32 to vector<1x4x1xf32>
      %31 = arith.mulf %29, %30 : vector<1x4x1xf32>
      %32 = arith.mulf %27, %27 : vector<1x4x1xf32>
      %33 = arith.subf %31, %32 : vector<1x4x1xf32>
      %c0_18 = arith.constant 0 : index
      %c0_19 = arith.constant 0 : index
      %34 = vector.load %arg5[%c0_18, %c0_19] : memref<4x1xf32, #tpu.memory_space<vmem>>, vector<4x1xf32>
      %35 = vector.shape_cast %34 : vector<4x1xf32> to vector<1x4x1xf32>
      %cst_20 = arith.constant 5.000000e-01 : f32
      %36 = vector.broadcast %cst_20 : f32 to vector<1x4x1xf32>
      %37 = arith.cmpf ogt, %35, %36 : vector<1x4x1xf32>
      %38 = vector.shape_cast %37 : vector<1x4x1xi1> to vector<1x4x1xi1>
      %39 = vector.broadcast %38 : vector<1x4x1xi1> to vector<2x4x1xi1>
      %40 = vector.shape_cast %27 : vector<1x4x1xf32> to vector<1x4x1xf32>
      %41 = vector.broadcast %40 : vector<1x4x1xf32> to vector<2x4x1xf32>
      %42 = arith.select %39, %19, %41 : vector<2x4x1xi1>, vector<2x4x1xf32>
      %43 = vector.shape_cast %37 : vector<1x4x1xi1> to vector<1x4x1xi1>
      %44 = vector.broadcast %43 : vector<1x4x1xi1> to vector<2x4x1xi1>
      %45 = vector.shape_cast %33 : vector<1x4x1xf32> to vector<1x4x1xf32>
      %46 = vector.broadcast %45 : vector<1x4x1xf32> to vector<2x4x1xf32>
      %47 = arith.select %44, %23, %46 : vector<2x4x1xi1>, vector<2x4x1xf32>
      %c0_21 = arith.constant 0 : index
      %c0_22 = arith.constant 0 : index
      %48 = vector.load %arg3[%c0_21, %c0_22] : memref<4x1xf32, #tpu.memory_space<vmem>>, vector<4x1xf32>
      %49 = vector.shape_cast %48 : vector<4x1xf32> to vector<1x4x1xf32>
      %c0_23 = arith.constant 0 : index
      %c0_24 = arith.constant 0 : index
      %50 = vector.load %arg4[%c0_23, %c0_24] : memref<4x1xf32, #tpu.memory_space<vmem>>, vector<4x1xf32>
      %51 = vector.shape_cast %50 : vector<4x1xf32> to vector<1x4x1xf32>
      %cst_25 = arith.constant 9.99999974E-6 : f32
      %52 = vector.broadcast %cst_25 : f32 to vector<2x4x1xf32>
      %53 = arith.addf %47, %52 : vector<2x4x1xf32>
      %54 = math.rsqrt %53 : vector<2x4x1xf32>
      %55 = vector.broadcast %49 : vector<1x4x1xf32> to vector<2x4x1xf32>
      %56 = arith.mulf %55, %54 : vector<2x4x1xf32>
      %c0_26 = arith.constant 0 : index
      %c0_27 = arith.constant 0 : index
      %c0_28 = arith.constant 0 : index
      %57 = vector.load %arg9[%c0_26, %c0_27, %c0_28] : memref<2x4x1xf32, #tpu.memory_space<vmem>>, vector<2x4x1xf32>
      tpu.vector_store %arg9[%c0_26, %c0_27, %c0_28], %56 {strides = array<i32>} : memref<2x4x1xf32, #tpu.memory_space<vmem>>, vector<2x4x1xf32>,
      %58 = arith.mulf %42, %56 : vector<2x4x1xf32>
      %59 = vector.broadcast %51 : vector<1x4x1xf32> to vector<2x4x1xf32>
      %60 = arith.subf %59, %58 : vector<2x4x1xf32>
      %c0_29 = arith.constant 0 : index
      %c0_30 = arith.constant 0 : index
      %c0_31 = arith.constant 0 : index
      %61 = vector.load %arg10[%c0_29, %c0_30, %c0_31] : memref<2x4x1xf32, #tpu.memory_space<vmem>>, vector<2x4x1xf32>
      tpu.vector_store %arg10[%c0_29, %c0_30, %c0_31], %60 {strides = array<i32>} : memref<2x4x1xf32, #tpu.memory_space<vmem>>, vector<2x4x1xf32>,
    } else {
    }
    %c1_i32_6 = arith.constant 1 : i32
    %13 = arith.cmpi eq, %arg0, %c1_i32_6 : i32
    %14 = arith.extui %13 : i1 to i32
    %c0_i32_7 = arith.constant 0 : i32
    %15 = arith.cmpi ne, %14, %c0_i32_7 : i32
    scf.if %15 {
      %c0 = arith.constant 0 : index
      %c0_8 = arith.constant 0 : index
      %c0_9 = arith.constant 0 : index
      %16 = vector.load %arg2[%c0, %c0_8, %c0_9] : memref<2x4x1024xf32, #tpu.memory_space<vmem>>, vector<2x4x1024xf32>
      %c0_10 = arith.constant 0 : index
      %c0_11 = arith.constant 0 : index
      %c0_12 = arith.constant 0 : index
      %17 = vector.load %arg9[%c0_10, %c0_11, %c0_12] : memref<2x4x1xf32, #tpu.memory_space<vmem>>, vector<2x4x1xf32>
      %18 = vector.broadcast %17 : vector<2x4x1xf32> to vector<2x4x1024xf32>
      %19 = arith.mulf %16, %18 : vector<2x4x1024xf32>
      %c0_13 = arith.constant 0 : index
      %c0_14 = arith.constant 0 : index
      %c0_15 = arith.constant 0 : index
      %20 = vector.load %arg10[%c0_13, %c0_14, %c0_15] : memref<2x4x1xf32, #tpu.memory_space<vmem>>, vector<2x4x1xf32>
      %21 = vector.broadcast %20 : vector<2x4x1xf32> to vector<2x4x1024xf32>
      %22 = arith.addf %19, %21 : vector<2x4x1024xf32>
      %c0_16 = arith.constant 0 : index
      %c0_17 = arith.constant 0 : index
      %c0_18 = arith.constant 0 : index
      %23 = vector.load %arg6[%c0_16, %c0_17, %c0_18] : memref<2x4x1024xf32, #tpu.memory_space<vmem>>, vector<2x4x1024xf32>
      tpu.vector_store %arg6[%c0_16, %c0_17, %c0_18], %22 {strides = array<i32>} : memref<2x4x1024xf32, #tpu.memory_space<vmem>>, vector<2x4x1024xf32>,
    } else {
    }
    return
  }
  func.func @transform_0(%arg0: i32, %arg1: i32) -> (i32, i32, i32) {
    %c0_i32 = arith.constant 0 : i32
    %c0_i32_0 = arith.constant 0 : i32
    %c0_i32_1 = arith.constant 0 : i32
    return %c0_i32, %c0_i32_0, %arg1 : i32, i32, i32
  }
  func.func @transform_1(%arg0: i32, %arg1: i32) -> (i32, i32) {
    %c0_i32 = arith.constant 0 : i32
    %c0_i32_0 = arith.constant 0 : i32
    %c0_i32_1 = arith.constant 0 : i32
    return %c0_i32, %c0_i32_0 : i32, i32
  }
  func.func @transform_2(%arg0: i32, %arg1: i32) -> (i32, i32) {
    %c0_i32 = arith.constant 0 : i32
    %c0_i32_0 = arith.constant 0 : i32
    %c0_i32_1 = arith.constant 0 : i32
    return %c0_i32, %c0_i32_0 : i32, i32
  }
  func.func @transform_3(%arg0: i32, %arg1: i32) -> (i32, i32) {
    %c0_i32 = arith.constant 0 : i32
    %c0_i32_0 = arith.constant 0 : i32
    %c0_i32_1 = arith.constant 0 : i32
    return %c0_i32, %c0_i32_0 : i32, i32
  }
  func.func @transform_4(%arg0: i32, %arg1: i32) -> (i32, i32, i32) {
    %0 = arith.muli %arg1, %arg0 : i32
    %c0_i32 = arith.constant 0 : i32
    %c0_i32_0 = arith.constant 0 : i32
    %c0_i32_1 = arith.constant 0 : i32
    return %c0_i32, %c0_i32_0, %0 : i32, i32, i32
  }
}

</mosaic_0001>

<bundles_post_ra>
// kernel: tpu_custom_call.1
= control target key start
LH: loop header
LB: loop body
LE: loop exit
PB: predicated region body
PF: predicated region fallthrough
CT: control target
= control target key end

     0   :  { %9 = vsyncpa [#allocation7], 0  ;;  %s925_s0 = inlined_call_operand.hbm [shape: f32[2,4,1024], index: 0, kind: input, shape index: {}]   ;;  %s926_s1 = inlined_call_operand.vmem [shape: f32[4,1], index: 1, kind: input, shape index: {}]   ;;  %s927_s2 = inlined_call_operand.vmem [shape: f32[4,1], index: 2, kind: input, shape index: {}]   ;;  %s928_s3 = inlined_call_operand.vmem [shape: f32[4,1], index: 3, kind: input, shape index: {}]   ;;  %s929_s4 = inlined_call_operand.hbm [shape: f32[2,4,1024], index: 4, kind: output, shape index: {}]  }
   0x1   :  { %10 = vsyncpa [#allocation8], 0 }
   0x2   :  { %12 = vsyncpa [#allocation8 + $0x1], 0  ;;  %s802_s15 = smov 0   ;;  %s804_s16 = smov 0  }
   0x3   :  { %s806_s17 = smov 0  }
   0x4 LB: > { %s602_s18 = sadd.s32 4294967295, %s766_s17   ;;  %s603_s19 = sadd.s32 4294967294, %s766_s17   ;;  %s766_s17 = sphi %s806_s17, %s18_s17   ;;  %s762_s16 = sphi %s804_s16, %s934_s16   ;;  %s758_s15 = sphi %s802_s15, %s933_s15  }
   0x5   : > { %s30_s20 = sadd.s32 1, %s762_s16  ;;  %p604_p0 = scmp.ge.s32.totalorder %s766_s17, 1 }
   0x6   : > { %p32_p1 = scmp.ge.s32.totalorder %s30_s20, 2  ;;  %p152_p2 = scmp.lt.s32.totalorder %s766_s17, 3 }
   0x7   : > { %p824_p3 = scmp.eq.s32.totalorder %s602_s18, 0  ;;  %s768_s23 = smov [#allocation6]  }
   0x8   : > { %s936_s20 = smov (%p32_p1, %s30_s20), 0  ;;  %p830_p4 = pnand %p604_p0, %p152_p2 }
   0x9   : > { %s167_s24 = sshll.u32 %s768_s23, 4  ;;  %s168_s24 = int_to_ptr.vmem [resolvable:$true] %s167_s24 }
   0xa   : > { %p626_p5 = pneg %p830_p4  ;;  %s697_s25 = scalar_lea.vmem %s168_s24, 1024 }
   0xb   : > { %p698_p8 = scmp.ne.s32.totalorder %s168_s24, %s697_s25  ;;  %p705_p11 = scmp.lt.s32.totalorder %s168_s24, %s168_s24 }
   0xc   : > { %p627_p6 = pnand %p824_p3, %p626_p5  ;;  %p706_p12 = scmp.lt.s32.totalorder %s697_s25, %s697_s25 }
   0xe   : > { %p688_p7 = pneg %p627_p6  ;;  %p707_p13 = por %p706_p12, %p705_p11 }
  0x10   : > { %p700_p9 = pnand %p698_p8, %p688_p7 }
  0x12   : > { %p701_p10 = pneg %p700_p9 }
  0x14   : > { %p708_p0 = pnand %p707_p13, %p701_p10 }
  0x16   : > { %711 = shalt.err (!%p708_p0)
}
  0x17   : > { %s769_s26 = smov 512   ;;  %s770_s27 = smov 32  }
  0x18   : > { %629 = dma.hbm_to_vmem [thread:$0]  (!%p627_p6), %s925_s0, 1024, %s168_s24, [#allocation7], %s769_s26, %s769_s26, %s770_s27  }
  0x19   : > { %192 = sbr.rel (%p830_p4) target bundleno = 416 (0x1a0), region = 36 }
  0x1e   : > { %749 = dma.done.wait (%p824_p3), [#allocation7], 1024  }
  0x1f   : > { %751 = vsyncadd (%p824_p3), [#allocation7], 4294966272  ;;  %p216_p1 = scmp.eq.s32.totalorder %s758_s15, 0 }
  0x20   : > { %vm222_vm0 = vcmask (%p216_p1), 3072   ;;  %v771_v0 = vmov (%p216_p1), 0.0  }
  0x21   : > { %221 = sbr.rel (!%p216_p1) target bundleno = 38 (0x26), region = 44  ;;  %223 = vst.msk [vmem:[#allocation2] sm:$0xf] (%p216_p1), %vm222_vm0, %v771_v0  ;;  %224 = vst.msk [vmem:[#allocation2 + $0x4] sm:$0xf] (%p216_p1), %vm222_vm0, %v771_v0 }
  0x22   : > { %225 = vst.msk [vmem:[#allocation3] sm:$0xf] (%p216_p1), %vm222_vm0, %v771_v0  ;;  %226 = vst.msk [vmem:[#allocation3 + $0x4] sm:$0xf] (%p216_p1), %vm222_vm0, %v771_v0 }
  0x26 PF: > { %p609_p2 = scmp.ne.s32.totalorder %s758_s15, 0 }
  0x28   : > { %229 = sbr.rel (%p609_p2) target bundleno = 215 (0xd7), region = 48 }
  0x2d   : > { %v230_v1 = vld [vmem:[#allocation6] sm:$0xff]  ;;  %v231_v2 = vld [vmem:[#allocation6 + $0x8] sm:$0xff]  ;;  %v232_v3 = vld [vmem:[#allocation6 + $0x10] sm:$0xff]  ;;  %vm264_vm1 = vcmask 1043456   ;;  %vm301_vm2 = vcmask 3072  }
  0x2e   : > { %v233_v4 = vld [vmem:[#allocation6 + $0x18] sm:$0xff]  ;;  %v306_v5 = vmul.f32 %v230_v1, %v230_v1  ;;  %v307_v6 = vmul.f32 %v231_v2, %v231_v2  ;;  %v308_v7 = vmul.f32 %v232_v3, %v232_v3  ;;  %v248_v8 = vcombine.high %v230_v1, %v230_v1  ;;  %v234_v19 = vld [vmem:[#allocation6 + $0x20] sm:$0xff]  ;;  %v235_v24 = vld [vmem:[#allocation6 + $0x28] sm:$0xff] }
  0x2f   : > { %v309_v9 = vmul.f32 %v233_v4, %v233_v4  ;;  %v249_v13 = vcombine.high %v231_v2, %v231_v2  ;;  %v250_v14 = vcombine.high %v232_v3, %v232_v3  ;;  %v265_v18 = vsel %vm264_vm1, %v230_v1, 0.0  ;;  %v236_v29 = vld [vmem:[#allocation6 + $0x30] sm:$0xff]  ;;  %v237_v39 = vld [vmem:[#allocation6 + $0x38] sm:$0xff] }
  0x30   : > { %v322_v10 = vcombine.high %v306_v5, %v306_v5  ;;  %v323_v11 = vcombine.high %v307_v6, %v307_v6  ;;  %v338_v12 = vsel %vm264_vm1, %v306_v5, 0.0  ;;  %v324_v15 = vcombine.high %v308_v7, %v308_v7 }
  0x31   : > { %v341_v17 = vsel %vm264_vm1, %v307_v6, 0.0  ;;  %v251_v21 = vcombine.high %v233_v4, %v233_v4  ;;  %v266_v22 = vsel %vm264_vm1, %v248_v8, 0.0  ;;  %v268_v23 = vsel %vm264_vm1, %v231_v2, 0.0 }
  0x32   : > { %v339_v16 = vsel %vm264_vm1, %v322_v10, 0.0  ;;  %v325_v25 = vcombine.high %v309_v9, %v309_v9  ;;  %v343_v26 = vsel %vm264_vm1, %v323_v11, 0.0  ;;  %v345_v27 = vsel %vm264_vm1, %v308_v7, 0.0 }
  0x33   : > { %v340_v20 = vadd.f32 %v339_v16, %v338_v12  ;;  %v267_v28 = vadd.f32 %v266_v22, %v265_v18  ;;  %v349_v31 = vsel %vm264_vm1, %v309_v9, 0.0  ;;  %v270_v32 = vsel %vm264_vm1, %v249_v13, 0.0 }
  0x34   : > { %v310_v33 = vmul.f32 %v234_v19, %v234_v19  ;;  %v347_v34 = vsel %vm264_vm1, %v324_v15, 0.0  ;;  %v272_v36 = vsel %vm264_vm1, %v232_v3, 0.0  ;;  %v311_v37 = vmul.f32 %v235_v24, %v235_v24 }
  0x35   : > { %v342_v30 = vadd.f32 %v341_v17, %v340_v20  ;;  %v269_v35 = vadd.f32 %v268_v23, %v267_v28  ;;  %v312_v40 = vmul.f32 %v236_v29, %v236_v29  ;;  %v351_v43 = vsel %vm264_vm1, %v325_v25, 0.0 }
  0x36   : > { %v326_v41 = vcombine.high %v310_v33, %v310_v33  ;;  %v355_v42 = vsel %vm264_vm1, %v310_v33, 0.0  ;;  %v274_v45 = vsel %vm264_vm1, %v250_v14, 0.0  ;;  %v327_v46 = vcombine.high %v311_v37, %v311_v37 }
  0x37   : > { %v344_v38 = vadd.f32 %v343_v26, %v342_v30  ;;  %v271_v44 = vadd.f32 %v270_v32, %v269_v35  ;;  %v358_v49 = vsel %vm264_vm1, %v311_v37, 0.0  ;;  %v252_v50 = vcombine.high %v234_v19, %v234_v19  ;;  %v238_v30 = vld [vmem:[#allocation2] sm:$0xf]  ;;  %v305_v35 = vld [vmem:[#allocation3 + $0x4] sm:$0xf] }
  0x38   : > { %v356_v48 = vsel %vm264_vm1, %v326_v41, 0.0  ;;  %v276_v52 = vsel %vm264_vm1, %v233_v4, 0.0  ;;  %v313_v53 = vmul.f32 %v237_v39, %v237_v39  ;;  %v328_v56 = vcombine.high %v312_v40, %v312_v40 }
  0x39   : > { %v346_v47 = vadd.f32 %v345_v27, %v344_v38  ;;  %v273_v51 = vadd.f32 %v272_v36, %v271_v44  ;;  %v357_v54 = vadd.f32 %v356_v48, %v355_v42  ;;  %v360_v57 = vsel %vm264_vm1, %v327_v46, 0.0  ;;  %v239_v38 = vld [vmem:[#allocation2 + $0x4] sm:$0xf] }
  0x3a   : > { %v253_v58 = vcombine.high %v235_v24, %v235_v24  ;;  %v278_v60 = vsel %vm264_vm1, %v251_v21, 0.0  ;;  %v362_v62 = vsel %vm264_vm1, %v312_v40, 0.0  ;;  %v282_v0 = vsel %vm264_vm1, %v234_v19, 0.0 }
  0x3b   : > { %v348_v55 = vadd.f32 %v347_v34, %v346_v47  ;;  %v275_v59 = vadd.f32 %v274_v45, %v273_v51  ;;  %v359_v61 = vadd.f32 %v358_v49, %v357_v54  ;;  %v283_v1 = vsel %vm264_vm1, %v252_v50, 0.0 }
  0x3c   : > { %v285_v2 = vsel %vm264_vm1, %v235_v24, 0.0  ;;  %v329_v4 = vcombine.high %v313_v53, %v313_v53  ;;  %v284_v6 = vadd.f32 %v283_v1, %v282_v0  ;;  %v364_v8 = vsel %vm264_vm1, %v328_v56, 0.0 }
  0x3d   : > { %v350_v63 = vadd.f32 %v349_v31, %v348_v55  ;;  %v277_v3 = vadd.f32 %v276_v52, %v275_v59  ;;  %v361_v5 = vadd.f32 %v360_v57, %v359_v61  ;;  %v254_v9 = vcombine.high %v236_v29, %v236_v29 }
  0x3e   : > { %v287_v10 = vsel %vm264_vm1, %v253_v58, 0.0  ;;  %v286_v13 = vadd.f32 %v285_v2, %v284_v6  ;;  %v366_v14 = vsel %vm264_vm1, %v313_v53, 0.0  ;;  %v289_v15 = vsel %vm264_vm1, %v236_v29, 0.0  ;;  %v304_v29 = vld [vmem:[#allocation3] sm:$0xf] }
  0x3f   : > { %v352_v7 = vadd.f32 %v351_v43, %v350_v63  ;;  %v279_v11 = vadd.f32 %v278_v60, %v277_v3  ;;  %v363_v12 = vadd.f32 %v362_v62, %v361_v5  ;;  %v368_v18 = vsel %vm264_vm1, %v329_v4, 0.0 }
  0x40   : > { %v288_v17 = vadd.f32 %v287_v10, %v286_v13  ;;  %v255_v19 = vcombine.high %v237_v39, %v237_v39  ;;  %v291_v20 = vsel %vm264_vm1, %v254_v9, 0.0  ;;  %v293_v23 = vsel %vm264_vm1, %v237_v39, 0.0 }
  0x41   : > { %353 = vadd.xlane.f32.xlu1 %v352_v7  ;;  %280 = vadd.xlane.f32.xlu0 %v279_v11  ;;  %v365_v16 = vadd.f32 %v364_v8, %v363_v12 }
  0x42   : > { %v290_v22 = vadd.f32 %v289_v15, %v288_v17  ;;  %v295_v26 = vsel %vm264_vm1, %v255_v19, 0.0 }
  0x43   : > { %v367_v21 = vadd.f32 %v366_v14, %v365_v16 }
  0x44   : > { %v292_v25 = vadd.f32 %v291_v20, %v290_v22 }
  0x45   : > { %v369_v24 = vadd.f32 %v368_v18, %v367_v21 }
  0x46   : > { %v294_v27 = vadd.f32 %v293_v23, %v292_v25 }
  0x47   : > { %370 = vadd.xlane.f32.xlu1 %v369_v24 }
  0x48   : > { %v296_v28 = vadd.f32 %v295_v26, %v294_v27 }
  0x4a   : > { %297 = vadd.xlane.f32.xlu0 %v296_v28 }
  0xca   : > { %v354_v31 = vpop.xlane.xlu1 %353  ;;  %v281_v33 = vpop.xlane.xlu0 %280 }
  0xcb   : > { %v372_v32 = vadd.f32 %v354_v31, %v304_v29  ;;  %v299_v34 = vadd.f32 %v281_v33, %v238_v30 }
  0xcd   : > { %374 = vst.msk [vmem:[#allocation3] sm:$0xf] %vm301_vm2, %v372_v32  ;;  %302 = vst.msk [vmem:[#allocation2] sm:$0xf] %vm301_vm2, %v299_v34 }
  0xd0   : > { %v371_v36 = vpop.xlane.xlu1 %370 }
  0xd1   : > { %v373_v37 = vadd.f32 %v371_v36, %v305_v35 }
  0xd3   : > { %375 = vst.msk [vmem:[#allocation3 + $0x4] sm:$0xf] %vm301_vm2, %v373_v37  ;;  %v298_v39 = vpop.xlane.xlu0 %297 }
  0xd4   : > { %v300_v40 = vadd.f32 %v298_v39, %v239_v38 }
  0xd6   : > { %303 = vst.msk [vmem:[#allocation2 + $0x4] sm:$0xf] %vm301_vm2, %v300_v40 }
  0xd7 PF: > { %p376_p3 = scmp.eq.s32.totalorder %s758_s15, 1 }
  0xd8   : > { %v381_v41 = vld [vmem:[#allocation2] sm:$0xf] (%p376_p3)  ;;  %v383_v43 = vld [vmem:[#allocation3] sm:$0xf] (%p376_p3)  ;;  %vm393_vm3 = vcmask (%p376_p3), 3072  }
  0xd9   : > { %380 = sbr.rel (!%p376_p3) target bundleno = 256 (0x100), region = 52  ;;  %v385_v45 = vmul.f32 (%p376_p3), 0.0009765625, %v381_v41  ;;  %v394_v47 = vsel (%p376_p3), %vm393_vm3, %v381_v41, 0.0  ;;  %v398_v49 = vsel (%p376_p3), %vm393_vm3, %v383_v43, 0.0  ;;  %v387_v51 = vmul.f32 (%p376_p3), 0.0009765625, %v383_v43 }
  0xda   : > { %v384_v44 = vld [vmem:[#allocation3 + $0x4] sm:$0xf] (%p376_p3)  ;;  %v404_v59 = vld [vmem:[%s928_s3] sm:$0xf] (%p376_p3) }
  0xdb   : > { %v399_v50 = vsel (%p376_p3), %vm393_vm3, %v384_v44, 0.0  ;;  %v389_v52 = vmul.f32 (%p376_p3), %v385_v45, %v385_v45  ;;  %v388_v55 = vmul.f32 (%p376_p3), 0.0009765625, %v384_v44  ;;  %vm405_vm4 = vcmp.gt.f32.partialorder (%p376_p3), %v404_v59, 0.5  ;;  %v412_v4 = vld [vmem:[%s926_s1] sm:$0xf] (%p376_p3) }
  0xdc   : > { %v400_v54 = vadd.f32 (%p376_p3), %v399_v50, %v398_v49  ;;  %v413_v11 = vld [vmem:[%s927_s2] sm:$0xf] (%p376_p3) }
  0xdd   : > { %v382_v42 = vld [vmem:[#allocation2 + $0x4] sm:$0xf] (%p376_p3)  ;;  %v391_v60 = vsub.f32 (%p376_p3), %v387_v51, %v389_v52 }
  0xde   : > { %v386_v46 = vmul.f32 0.0009765625, %v382_v42  ;;  %v395_v48 = vsel %vm393_vm3, %v382_v42, 0.0  ;;  %v401_v58 = vmul.f32 0.00048828125, %v400_v54 }
  0xdf   : > { %v396_v53 = vadd.f32 %v395_v48, %v394_v47 }
  0xe0   : > { %v390_v56 = vmul.f32 %v386_v46, %v386_v46 }
  0xe1   : > { %v397_v57 = vmul.f32 0.00048828125, %v396_v53 }
  0xe2   : > { %v392_v62 = vsub.f32 %v388_v55, %v390_v56 }
  0xe3   : > { %v402_v61 = vmul.f32 %v397_v57, %v397_v57  ;;  %v408_v6 = vsel %vm405_vm4, %v385_v45, %v397_v57  ;;  %v409_v9 = vsel %vm405_vm4, %v386_v46, %v397_v57 }
  0xe5   : > { %v403_v63 = vsub.f32 %v401_v58, %v402_v61 }
  0xe7   : > { %v410_v0 = vsel %vm405_vm4, %v391_v60, %v403_v63  ;;  %v411_v1 = vsel %vm405_vm4, %v392_v62, %v403_v63 }
  0xe8   : > { %v414_v2 = vadd.f32 1e-05, %v410_v0  ;;  %v415_v3 = vadd.f32 1e-05, %v411_v1 }
  0xea   : > { %680 = vrsqrt.f32 %v414_v2 }
  0xeb   : > { %682 = vrsqrt.f32 %v415_v3 }
  0xf7   : > { %v681_v5 = vpop.eup %680 }
  0xf8   : > { %v683_v7 = vpop.eup %682  ;;  %v418_v8 = vmul.f32 %v681_v5, %v412_v4 }
  0xf9   : > { %v419_v10 = vmul.f32 %v683_v7, %v412_v4 }
  0xfa   : > { %420 = vst.msk [vmem:[#allocation4] sm:$0xf] %vm393_vm3, %v418_v8  ;;  %v422_v12 = vmul.f32 %v418_v8, %v408_v6 }
  0xfb   : > { %421 = vst.msk [vmem:[#allocation4 + $0x4] sm:$0xf] %vm393_vm3, %v419_v10  ;;  %v423_v13 = vmul.f32 %v419_v10, %v409_v9 }
  0xfc   : > { %v424_v14 = vsub.f32 %v413_v11, %v422_v12 }
  0xfd   : > { %v425_v15 = vsub.f32 %v413_v11, %v423_v13 }
  0xfe   : > { %426 = vst.msk [vmem:[#allocation5] sm:$0xf] %vm393_vm3, %v424_v14 }
  0xff   : > { %427 = vst.msk [vmem:[#allocation5 + $0x4] sm:$0xf] %vm393_vm3, %v425_v15 }
 0x100 PF: > { %p611_p4 = scmp.ne.s32.totalorder %s758_s15, 1 }
 0x102   : > { %430 = sbr.rel (%p611_p4) target bundleno = 402 (0x192), region = 56 }
 0x107   : > { %v473_v16 = vld [vmem:[#allocation5] sm:$0xf]  ;;  %v439_v17 = vld [vmem:[#allocation4] sm:$0xf]  ;;  %v772_v18 = vmov 0   ;;  %v452_v23 = vlaneseq  ;;  %v431_v27 = vld [vmem:[#allocation6] sm:$0xff] }
 0x108   : > { %685 = vset.pattern.permute.xlu1 %v772_v18  ;;  %684 = vset.pattern.permute.xlu0 %v772_v18  ;;  %v474_v19 = vld [vmem:[#allocation5 + $0x4] sm:$0xf]  ;;  %v440_v20 = vld [vmem:[#allocation4 + $0x4] sm:$0xf]  ;;  %v773_v21 = vmov 839922192  }
 0x109   : > { %477 = vperm.xlu1 %685, %v473_v16   ;;  %443 = vperm.xlu0 %684, %v439_v17   ;;  %v450_v22 = vunpack.c.l.s4 %v773_v21  ;;  %v453_v25 = vshrl.u32 %v452_v23, 7  ;;  %v432_v30 = vld [vmem:[#allocation6 + $0x8] sm:$0xff]  ;;  %v433_v31 = vld [vmem:[#allocation6 + $0x10] sm:$0xff]  ;;  %v434_v32 = vld [vmem:[#allocation6 + $0x18] sm:$0xff] }
 0x10a   : > { %v435_v41 = vld [vmem:[#allocation6 + $0x20] sm:$0xff]  ;;  %v436_v46 = vld [vmem:[#allocation6 + $0x28] sm:$0xff]  ;;  %v437_v47 = vld [vmem:[#allocation6 + $0x30] sm:$0xff] }
 0x10b   : > { %v451_v24 = vunpack.c.0.s8 %v450_v22  ;;  %v438_v48 = vld [vmem:[#allocation6 + $0x38] sm:$0xff] }
 0x10d   : > { %481 = vperm.xlu1 %685, %v474_v19   ;;  %447 = vperm.xlu0 %684, %v440_v20   ;;  %v454_v26 = vsub.s32 %v451_v24, %v453_v25 }
 0x184   : > { %v478_v28 = vpop.permute.xlu1 %477  ;;  %v444_v29 = vpop.permute.xlu0 %443 }
 0x185   : > { %v489_v33 = vrot.slane %v478_v28, %v454_v26  ;;  %v455_v34 = vrot.slane %v444_v29, %v454_v26 }
 0x187   : > { %v465_v35 = vmul.f32 %v455_v34, %v431_v27  ;;  %v466_v36 = vmul.f32 %v455_v34, %v432_v30  ;;  %v467_v37 = vmul.f32 %v455_v34, %v433_v31  ;;  %v468_v38 = vmul.f32 %v455_v34, %v434_v32 }
 0x188   : > { %v482_v39 = vpop.permute.xlu1 %481  ;;  %v448_v40 = vpop.permute.xlu0 %447 }
 0x189   : > { %v499_v42 = vadd.f32 %v489_v33, %v465_v35  ;;  %v500_v43 = vadd.f32 %v489_v33, %v466_v36  ;;  %v501_v44 = vadd.f32 %v489_v33, %v467_v37  ;;  %v502_v45 = vadd.f32 %v489_v33, %v468_v38 }
 0x18a   : > { %v462_v49 = vrot.slane %v448_v40, %v454_v26  ;;  %v496_v50 = vrot.slane %v482_v39, %v454_v26 }
 0x18b   : > { %507 = vst [vmem:[#allocation9] sm:$0xff] %v499_v42  ;;  %508 = vst [vmem:[#allocation9 + $0x8] sm:$0xff] %v500_v43 }
 0x18c   : > { %509 = vst [vmem:[#allocation9 + $0x10] sm:$0xff] %v501_v44  ;;  %510 = vst [vmem:[#allocation9 + $0x18] sm:$0xff] %v502_v45  ;;  %v469_v51 = vmul.f32 %v462_v49, %v435_v41  ;;  %v470_v52 = vmul.f32 %v462_v49, %v436_v46  ;;  %v471_v53 = vmul.f32 %v462_v49, %v437_v47 }
 0x18d   : > { %v472_v54 = vmul.f32 %v462_v49, %v438_v48 }
 0x18e   : > { %v503_v55 = vadd.f32 %v496_v50, %v469_v51  ;;  %v504_v56 = vadd.f32 %v496_v50, %v470_v52  ;;  %v505_v57 = vadd.f32 %v496_v50, %v471_v53 }
 0x18f   : > { %v506_v58 = vadd.f32 %v496_v50, %v472_v54 }
 0x190   : > { %511 = vst [vmem:[#allocation9 + $0x20] sm:$0xff] %v503_v55  ;;  %512 = vst [vmem:[#allocation9 + $0x28] sm:$0xff] %v504_v56 }
 0x191   : > { %513 = vst [vmem:[#allocation9 + $0x30] sm:$0xff] %v505_v57  ;;  %514 = vst [vmem:[#allocation9 + $0x38] sm:$0xff] %v506_v58 }
 0x192 PF: > { %p902_p5 = scmp.eq.s32.totalorder %s602_s18, 1  ;;  %s774_s11 = smov [#allocation9]  }
 0x193   : > { %s530_s12 = sshll.u32 %s774_s11, 4  ;;  %s531_s12 = int_to_ptr.vmem [resolvable:$true] %s530_s12 }
 0x194   : > { %s712_s13 = scalar_lea.vmem %s531_s12, 1024  ;;  %s718_s14 = scalar_lea.vmem %s531_s12, 2048 }
 0x195   : > { %p713_p6 = scmp.ne.s32.totalorder %s531_s12, %s712_s13  ;;  %p719_p9 = scmp.lt.s32.totalorder %s531_s12, %s531_s12 }
 0x196   : > { %p720_p10 = scmp.lt.s32.totalorder %s718_s14, %s712_s13 }
 0x197   : > { %p714_p7 = pnand %p713_p6, %p902_p5 }
 0x198   : > { %p721_p11 = por %p720_p10, %p719_p9 }
 0x199   : > { %p715_p8 = pneg %p714_p7 }
 0x19b   : > { %p722_p12 = pnand %p721_p11, %p715_p8 }
 0x19d   : > { %725 = shalt.err (!%p722_p12)
}
 0x19e   : > { %s775_s15 = smov 512   ;;  %s776_s18 = smov 32  }
 0x19f   : > { %623 = dma.vmem_to_hbm [thread:$0]  (%p902_p5), %s531_s12, 1024, %s929_s4, [#allocation8], %s775_s15, %s775_s15, %s776_s18  }
 0x1a0 PF: > { %p637_p13 = scmp.ge.s32.totalorder %s766_s17, 2  ;;  %p638_p0 = scmp.eq.s32.totalorder %s603_s19, 1 }
 0x1a2   : > { %p631_p1 = pnand %p638_p0, %p637_p13 }
 0x1a4   : > { %p632_p2 = pneg %p631_p1 }
 0x1a6   : > { %753 = dma.done.wait (%p632_p2), [#allocation8], 1024  }
 0x1a7   : > { %755 = vsyncadd (%p632_p2), [#allocation8], 4294966272  ;;  %s18_s17 = sadd.s32 1, %s766_s17   ;;  %s933_s15 = smov %s762_s16 }
 0x1a8   : > { %p15_p3 = scmp.ge.s32.totalorder %s18_s17, 4   ;;  %s934_s16 = smov %s936_s20 }
 0x1aa   :  { %17 = sbr.rel (!%p15_p3) target bundleno = 4 (0x4), region = 90 }
 0x1af   :  { %551 = vsyncpa [#allocation7], 1 }
 0x1b0   :  { %553 = vsyncpa [#allocation7 + $0x1], 1 }
 0x1b1   :  { %554 = vsyncpa [#allocation8], 1 }
 0x1b2   :  { %556 = vsyncpa [#allocation8 + $0x1], 1 }

</bundles_post_ra>
